<compile_context>
chip_gen: v7x
topology: tpu7x:2x2x1
jax: 0.10.0
libtpu: 0.0.40
codegen_flags: <defaults>
</compile_context>

<pallas_src>
import functools

import jax
import jax.numpy as jnp
from jax.experimental import pallas as pl
from jax.experimental.pallas import tpu as pltpu


def _round_up(a: int, m: int) -> int:
    return (a + m - 1) // m * m


def mlp_kernel(x_ref, w1_ref, w2_ref, o_ref):
    # lin_1 (bf16 operands, f32 accumulate on MXU)
    h = jnp.dot(x_ref[...], w1_ref[...], preferred_element_type=jnp.float32)
    # ReLU in f32 on the VPU (avoids bf16 elementwise ops — v5e has no bf16 VPU).
    h = jnp.maximum(h, 0.0)
    # lin_2: downcast activations to bf16 for the MXU, accumulate in f32.
    y = jnp.dot(h.astype(w2_ref.dtype), w2_ref[...],
                preferred_element_type=jnp.float32)
    o_ref[...] = y.astype(o_ref.dtype)


@functools.partial(jax.jit, static_argnames=("block_b",))
def mlp_forward(x, w1_t, w2_t, *, block_b=512):
    """x: (B, input_dim); w1_t: (input_dim, hid_dim); w2_t: (hid_dim, out_dim)."""
    B, input_dim = x.shape
    hid_dim = w1_t.shape[1]
    out_dim = w2_t.shape[1]
    out_dtype = x.dtype

    # Lane-dense padding for the MXU / output stores.
    hid_pad = _round_up(hid_dim, 128)
    out_pad = _round_up(out_dim, 128)

    # Batch tiling: multiple of 8 sublanes; cap so VMEM buffers stay small even
    # on v7x (64 MiB physical / 32 MiB scoped default).  TB=512 fp32/bf16
    # buffers are well under 1 MiB each.
    tb = min(block_b, _round_up(B, 8))
    b_pad = _round_up(B, tb)

    bf16 = jnp.bfloat16

    # Zero-pad (padded W1 columns / W2 rows are exactly zero, so padded hidden
    # units contribute nothing; padded output columns are sliced off below).
    xp = jnp.zeros((b_pad, input_dim), bf16).at[:B, :].set(x.astype(bf16))
    w1p = jnp.zeros((input_dim, hid_pad), bf16).at[:, :hid_dim].set(
        w1_t.astype(bf16))
    w2p = jnp.zeros((hid_pad, out_pad), bf16).at[:hid_dim, :out_dim].set(
        w2_t.astype(bf16))

    num_tiles = b_pad // tb

    flops = 2 * b_pad * (input_dim * hid_pad + hid_pad * out_pad)
    bytes_accessed = (xp.size * 2 + w1p.size * 2 + w2p.size * 2
                      + b_pad * out_pad * 4)

    y_pad = pl.pallas_call(
        mlp_kernel,
        out_shape=jax.ShapeDtypeStruct((b_pad, out_pad), jnp.float32),
        grid_spec=pltpu.PrefetchScalarGridSpec(
            num_scalar_prefetch=0,
            grid=(num_tiles,),
            in_specs=[
                # x: one batch tile per grid step (auto double-buffered).
                pl.BlockSpec((tb, input_dim), lambda i: (i, 0)),
                # Weights: constant block index -> fetched once, VMEM-resident.
                pl.BlockSpec((input_dim, hid_pad), lambda i: (0, 0)),
                pl.BlockSpec((hid_pad, out_pad), lambda i: (0, 0)),
            ],
            out_specs=pl.BlockSpec((tb, out_pad), lambda i: (i, 0)),
        ),
        compiler_params=pltpu.CompilerParams(
            # Batch tiles are independent -> parallel (uses both TCs on v7x;
            # harmless on single-TC v5e/v6e).
            dimension_semantics=("parallel",),
        ),
        cost_estimate=pl.CostEstimate(
            flops=flops, transcendentals=0, bytes_accessed=bytes_accessed),
    )(xp, w1p, w2p)

    # Drop batch / output-column padding.
    return y_pad[:B, :out_dim].astype(out_dtype)


if __name__ == "__main__":
    # Synthetic config: hidden_dim = 32, woEMO = False
    hidden_dim = 32
    input_num, hid_num = 5, 3
    input_dim = input_num * hidden_dim   # 160
    hid_dim = hid_num * hidden_dim       # 96
    out_dim = hidden_dim                 # 32
    batch = 12                           # not a multiple of the tile -> tests padding

    key = jax.random.PRNGKey(0)
    kx, k1, k2 = jax.random.split(key, 3)

    x = jax.random.normal(kx, (batch, input_dim), dtype=jnp.float32)

    # Deterministic init matching nn.Linear default: U(-1/sqrt(fan_in), 1/sqrt(fan_in)).
    bound1 = 1.0 / jnp.sqrt(jnp.float32(input_dim))
    bound2 = 1.0 / jnp.sqrt(jnp.float32(hid_dim))
    # Stored pre-transposed as (in, out).
    w1_t = jax.random.uniform(k1, (input_dim, hid_dim), jnp.float32, -bound1, bound1)
    w2_t = jax.random.uniform(k2, (hid_dim, out_dim), jnp.float32, -bound2, bound2)

    y = mlp_forward(x, w1_t, w2_t)
    y = jax.block_until_ready(y)
    assert y.shape == (batch, out_dim)

    # Reference with matching bf16 operand casts (tight tolerance).
    bf16 = jnp.bfloat16
    h_ref = jnp.dot(x.astype(bf16), w1_t.astype(bf16),
                    preferred_element_type=jnp.float32)
    h_ref = jnp.maximum(h_ref, 0.0).astype(bf16)
    y_ref_bf16 = jnp.dot(h_ref, w2_t.astype(bf16),
                         preferred_element_type=jnp.float32)
    assert jnp.allclose(y, y_ref_bf16, atol=1e-2, rtol=1e-2)

    # Pure-f32 reference (loose tolerance — bf16 operand rounding).
    y_ref_f32 = jnp.maximum(x @ w1_t, 0.0) @ w2_t
    assert jnp.allclose(y, y_ref_f32, atol=5e-2, rtol=5e-2)

    print("KERNEL_OK")
</pallas_src>

<mosaic_0001>
module attributes {stable_mosaic.version = 11 : i64} {
  func.func @mlp_kernel(%arg0: i32, %arg1: memref<16x160xbf16, #tpu.memory_space<vmem>>, %arg2: memref<160x128xbf16, #tpu.memory_space<vmem>>, %arg3: memref<128x128xbf16, #tpu.memory_space<vmem>>, %arg4: memref<16x128xf32, #tpu.memory_space<vmem>>) attributes {dimension_semantics = [#tpu.dimension_semantics<parallel>], iteration_bounds = array<i64: 1>, scalar_prefetch = 0 : i64, scratch_operands = 0 : i64, tpu.core_type = #tpu.core_type<tc>, window_params = [{transform_indices = @transform_0, window_bounds = array<i64: 16, 160>}, {pipeline_mode = #tpu.pipeline_mode<synchronous>, transform_indices = @transform_1, window_bounds = array<i64: 160, 128>}, {pipeline_mode = #tpu.pipeline_mode<synchronous>, transform_indices = @transform_2, window_bounds = array<i64: 128, 128>}, {transform_indices = @transform_3, window_bounds = array<i64: 16, 128>}]} {
    %c0 = arith.constant 0 : index
    %c0_0 = arith.constant 0 : index
    %0 = vector.load %arg1[%c0, %c0_0] : memref<16x160xbf16, #tpu.memory_space<vmem>>, vector<16x160xbf16>
    %c0_1 = arith.constant 0 : index
    %c0_2 = arith.constant 0 : index
    %1 = vector.load %arg2[%c0_1, %c0_2] : memref<160x128xbf16, #tpu.memory_space<vmem>>, vector<160x128xbf16>
    %cst = arith.constant dense<0.000000e+00> : vector<16x128xf32>
    %2 = tpu.matmul %0, %1, %cst {dimension_numbers = #tpu.dot_dimension_numbers<[1], [0], [0], [1], [0, 0, 1, 1], [], []>} : vector<16x160xbf16>, vector<160x128xbf16>, vector<16x128xf32> -> vector<16x128xf32>
    %cst_3 = arith.constant 0.000000e+00 : f32
    %3 = vector.broadcast %cst_3 : f32 to vector<16x128xf32>
    %4 = arith.maximumf %2, %3 : vector<16x128xf32>
    %5 = arith.truncf %4 : vector<16x128xf32> to vector<16x128xbf16>
    %c0_4 = arith.constant 0 : index
    %c0_5 = arith.constant 0 : index
    %6 = vector.load %arg3[%c0_4, %c0_5] : memref<128x128xbf16, #tpu.memory_space<vmem>>, vector<128x128xbf16>
    %cst_6 = arith.constant dense<0.000000e+00> : vector<16x128xf32>
    %7 = tpu.matmul %5, %6, %cst_6 {dimension_numbers = #tpu.dot_dimension_numbers<[1], [0], [0], [1], [0, 0, 1, 1], [], []>} : vector<16x128xbf16>, vector<128x128xbf16>, vector<16x128xf32> -> vector<16x128xf32>
    %c0_7 = arith.constant 0 : index
    %c0_8 = arith.constant 0 : index
    %8 = vector.load %arg4[%c0_7, %c0_8] : memref<16x128xf32, #tpu.memory_space<vmem>>, vector<16x128xf32>
    tpu.vector_store %arg4[%c0_7, %c0_8], %7 {strides = array<i32>} : memref<16x128xf32, #tpu.memory_space<vmem>>, vector<16x128xf32>,
    return
  }
  func.func @transform_0(%arg0: i32) -> (i32, i32) {
    %c0_i32 = arith.constant 0 : i32
    %c0_i32_0 = arith.constant 0 : i32
    return %arg0, %c0_i32 : i32, i32
  }
  func.func @transform_1(%arg0: i32) -> (i32, i32) {
    %c0_i32 = arith.constant 0 : i32
    %c0_i32_0 = arith.constant 0 : i32
    %c0_i32_1 = arith.constant 0 : i32
    return %c0_i32, %c0_i32_0 : i32, i32
  }
  func.func @transform_2(%arg0: i32) -> (i32, i32) {
    %c0_i32 = arith.constant 0 : i32
    %c0_i32_0 = arith.constant 0 : i32
    %c0_i32_1 = arith.constant 0 : i32
    return %c0_i32, %c0_i32_0 : i32, i32
  }
  func.func @transform_3(%arg0: i32) -> (i32, i32) {
    %c0_i32 = arith.constant 0 : i32
    %c0_i32_0 = arith.constant 0 : i32
    return %arg0, %c0_i32 : i32, i32
  }
}

</mosaic_0001>

<bundles_post_ra>
// kernel: mlp_forward.1
= control target key start
LH: loop header
LB: loop body
LE: loop exit
PB: predicated region body
PF: predicated region fallthrough
CT: control target
= control target key end

     0   :  { %v379_v1 = vmov 0   ;;  %v380_v3 = vmov 0.0   ;;  %vm107_vm0 = vcmask 261120   ;;  %s477_s0 = inlined_call_operand.vmem [shape: bf16[16,160], index: 0, kind: input, shape index: {}]   ;;  %s478_s1 = inlined_call_operand.vmem [shape: bf16[160,128], index: 1, kind: input, shape index: {}]   ;;  %s479_s2 = inlined_call_operand.vmem [shape: bf16[128,128], index: 2, kind: input, shape index: {}]   ;;  %s480_s3 = inlined_call_operand.hbm [shape: f32[16,128], index: 3, kind: output, shape index: {}]  }
   0x1   :  { %v334_v0 = vld [vmem:[%s478_s1] sm:$0xff]   ;;  %111 = vmatprep.subr.bf16.mxu0 %v379_v1  ;;  %v335_v2 = vld [vmem:[%s478_s1 + $0x8] sm:$0xff]   ;;  %308 = vmatprep.subr.bf16.mxu1 %v380_v3  ;;  %v336_v4 = vld [vmem:[%s478_s1 + $0x10] sm:$0xff]  }
   0x2   :  { %112 = vmatpush1.bf16.msra.mxu0 %v334_v0  ;;  %v337_v5 = vld [vmem:[%s478_s1 + $0x18] sm:$0xff]   ;;  %v346_v6 = vld [vmem:[%s477_s0 + $0x4] ss:$8 sps:$4 sm:$0xff]   ;;  %v349_v11 = vld [vmem:[%s479_s2 + $0x10] sm:$0xff]  }
   0x3   :  { %113 = vmatprep.subr.bf16.mxu0 %v379_v1  ;;  %v347_v7 = vld [vmem:[%s479_s2] sm:$0xff]   ;;  %290 = vmatprep.mubr.msk.bf16.mxu0 %vm107_vm0, %v346_v6  ;;  %v348_v9 = vld [vmem:[%s479_s2 + $0x8] sm:$0xff]  }
   0x4   :  { %v338_v8 = vld [vmem:[%s478_s1 + $0x20] sm:$0xff]   ;;  %309 = vmatpush3.bf16.msra.mxu1 %v347_v7  ;;  %v339_v10 = vld [vmem:[%s478_s1 + $0x28] sm:$0xff]  }
   0x5   :  { %310 = vmatprep.subr.bf16.mxu1 %v380_v3 }
   0x6   :  { %114 = vmatpush1.bf16.msra.mxu0 %v335_v2 }
   0x7   :  { %115 = vmatprep.subr.bf16.mxu0 %v379_v1 }
   0x8   :  { %311 = vmatpush3.bf16.msra.mxu1 %v348_v9 }
   0xa   :  { %116 = vmatpush1.bf16.msra.mxu0 %v336_v4 }
   0xb   :  { %117 = vmatprep.subr.bf16.mxu0 %v379_v1 }
   0xe   :  { %118 = vmatpush1.bf16.msra.mxu0 %v337_v5 }
   0xf   :  { %119 = vmatprep.subr.bf16.mxu0 %v379_v1 }
  0x12   :  { %120 = vmatpush1.bf16.msra.mxu0 %v338_v8 }
  0x13   :  { %8 = vsyncpa [#allocation3], 0  ;;  %121 = vmatprep.subr.bf16.mxu0 %v379_v1  ;;  %312 = vmatprep.subr.bf16.mxu1 %v380_v3  ;;  %v340_v12 = vld [vmem:[%s478_s1 + $0x30] sm:$0xff]   ;;  %v350_v13 = vld [vmem:[%s479_s2 + $0x18] sm:$0xff]   ;;  %vm381_vm1 = vmmov 0  }
  0x14   :  { %313 = vmatpush3.bf16.msra.mxu1 %v349_v11  ;;  %v341_v14 = vld [vmem:[%s478_s1 + $0x38] sm:$0xff]   ;;  %v351_v15 = vld [vmem:[%s479_s2 + $0x20] sm:$0xff]   ;;  %v352_v17 = vld [vmem:[%s479_s2 + $0x28] sm:$0xff]   ;;  %324 = vmatprep.mubr.msk.bf16.mxu1 %vm381_vm1, %v380_v3 }
  0x15   :  { %314 = vmatprep.subr.bf16.mxu1 %v380_v3  ;;  %v342_v16 = vld [vmem:[%s478_s1 + $0x40] sm:$0xff]   ;;  %v343_v18 = vld [vmem:[%s478_s1 + $0x48] sm:$0xff]   ;;  %v353_v20 = vld [vmem:[%s479_s2 + $0x30] sm:$0xff]  }
  0x16   :  { %122 = vmatpush1.bf16.msra.mxu0 %v339_v10  ;;  %v344_v19 = vld [vmem:[%s477_s0] ss:$8 sps:$4 sm:$0xff]   ;;  %v354_v21 = vld [vmem:[%s479_s2 + $0x38] sm:$0xff]   ;;  %s382_s0 = smov [#allocation2]  }
  0x17   :  { %123 = vmatprep.subr.bf16.mxu0 %v379_v1  ;;  %s267_s1 = sshll.u32 %s382_s0, 4  ;;  %s268_s1 = int_to_ptr.vmem [resolvable:$true] %s267_s1 }
  0x18   :  { %315 = vmatpush3.bf16.msra.mxu1 %v350_v13  ;;  %s355_s2 = scalar_lea.vmem %s268_s1, 256  ;;  %p360_p1 = scmp.lt.s32.totalorder %s268_s1, %s268_s1 }
  0x19   :  { %316 = vmatprep.subr.bf16.mxu1 %v380_v3  ;;  %p356_p0 = scmp.ne.s32.totalorder %s268_s1, %s355_s2  ;;  %p361_p2 = scmp.lt.s32.totalorder %s355_s2, %s355_s2 }
  0x1a   :  { %124 = vmatpush1.bf16.msra.mxu0 %v340_v12 }
  0x1b   :  { %125 = vmatprep.subr.bf16.mxu0 %v379_v1  ;;  %p362_p3 = por %p361_p2, %p360_p1 }
  0x1c   :  { %317 = vmatpush3.bf16.msra.mxu1 %v351_v15 }
  0x1d   :  { %318 = vmatprep.subr.bf16.mxu1 %v380_v3  ;;  %p363_p4 = pnand %p362_p3, %p356_p0 }
  0x1e   :  { %126 = vmatpush1.bf16.msra.mxu0 %v341_v14 }
  0x1f   :  { %127 = vmatprep.subr.bf16.mxu0 %v379_v1 }
  0x20   :  { %319 = vmatpush3.bf16.msra.mxu1 %v352_v17 }
  0x21   :  { %320 = vmatprep.subr.bf16.mxu1 %v380_v3 }
  0x22   :  { %128 = vmatpush1.bf16.msra.mxu0 %v342_v16 }
  0x23   :  { %129 = vmatprep.subr.bf16.mxu0 %v379_v1 }
  0x24   :  { %321 = vmatpush3.bf16.msra.mxu1 %v353_v20 }
  0x25   :  { %322 = vmatprep.subr.bf16.mxu1 %v380_v3 }
  0x26   :  { %130 = vmatpush1.bf16.msra.mxu0 %v343_v18 }
  0x28   :  { %323 = vmatpush3.bf16.msra.mxu1 %v354_v21 }
  0x29   :  { %144 = vmatmul.mubr.bf16.vlgmr.msra.gmra.mrb[0].mxu0 %v344_v19 }
  0xfc   :  { %v145_v22 = vpop.f32.mrb[0].mxu0 }
  0xfd   :  { %v147_v23 = vpop.f32.mrb[1].mxu0  ;;  %v152_v25 = vmax.f32 %v145_v22, 0.0 }
  0xfe   :  { %v148_v24 = vpop.f32.mrb[2].mxu0 }
  0xff   :  { %v153_v26 = vmax.f32 %v148_v24, 0.0  ;;  %v150_v27 = vpop.f32.mrb[3].mxu0 }
 0x101   :  { %v154_v28 = vpack.c.bf16 %v153_v26, %v152_v25 }
 0x103   :  { %325 = vmatmul.mubr.bf16.vlgmr.msra.gmra.mrb[0].mxu1 %v154_v28 }
 0x1d6   :  { %v253_v29 = vpop.f32.mrb[0].mxu1 }
 0x1d7   :  { %260 = vst [vmem:[#allocation2] sm:$0xff] %v253_v29  ;;  %v326_v30 = vpop.f32.mrb[1].mxu1 }
 0x1d8   :  { %v256_v31 = vpop.f32.mrb[2].mxu1 }
 0x1d9   :  { %261 = vst [vmem:[#allocation2 + $0x8] sm:$0xff] %v256_v31  ;;  %v327_v32 = vpop.f32.mrb[3].mxu1 }
 0x1da   :  { %366 = shalt.err (!%p363_p4)
}
 0x1db   :  { %s367_s27 = scalar_lea.hbm %s480_s3, 256 }
 0x1dc   :  { %p368_p5 = scmp.ne.s32.totalorder %s480_s3, %s367_s27  ;;  %p371_p6 = scmp.lt.u32.totalorder %s367_s27, %s480_s3 }
 0x1de   :  { %p373_p7 = pnand %p371_p6, %p368_p5 }
 0x1e0   :  { %376 = shalt.err (!%p373_p7)
}
 0x1e1   :  { %s383_s5 = smov 128   ;;  %s384_s6 = smov 8  }
 0x1e2   :  { %273 = dma.vmem_to_hbm [thread:$0]  %s268_s1, 256, %s480_s3, [#allocation3], %s383_s5, %s383_s5, %s384_s6  }
 0x1e3   :  { %377 = dma.done.wait [#allocation3], 256  }
 0x1e4   :  { %378 = vsyncadd [#allocation3], 4294967040 }
 0x1e5   :  { %277 = vsyncpa [#allocation3], 1 }

</bundles_post_ra>
